<compile_context>
chip_gen: v7x
topology: tpu7x:2x2x1
jax: 0.10.0
libtpu: 0.0.40
codegen_flags: <defaults>
</compile_context>

<pallas_src>
import jax
import jax.numpy as jnp
from jax.experimental import pallas as pl
from jax.experimental.pallas import tpu as pltpu


_TILE_BYTES = 1 << 20        # ~1 MiB budget for one (tl, td) slab of one batch row
_STEP_BYTES = 2 << 20        # ~2 MiB target for a full (tb, tl, td) grid-step block
_MIN_PALLAS_BYTES = 1 << 20  # below ~1 MiB, let XLA handle/fuse the transpose


def _axis_caps(itemsize: int) -> tuple[int, int]:
    """Per-axis element caps keeping one (tl, td) slab at ~_TILE_BYTES bytes."""
    if itemsize >= 4:
        return 512, 512            # f32/f64: 512*512*4   = 1 MiB (f64: 2 MiB)
    if itemsize == 2:
        return 512, 1024           # bf16:    512*1024*2  = 1 MiB
    return 1024, 1024              # int8/fp8: 1024*1024  = 1 MiB


def _pick_tile(dim: int, cap: int) -> int:
    """Block size for one of the two transposed axes.

    Legal choices (the (8,128) BlockSpec rule must hold on BOTH the input
    block and the swapped output block): the full dim, or a multiple of 128.
    Only prefer an exact divisor if it is within one 128-step of the cap;
    otherwise keep the near-cap tile and let Pallas mask a single ragged edge
    block (far cheaper than shrinking EVERY tile, e.g. dim=640 -> 512, not 128).
    """
    if dim <= cap:
        return dim
    base = max(cap - cap % 128, 128)
    for t in (base, base - 128):
        if t >= 128 and dim % t == 0:
            return t
    return base


def _pick_batch_block(batch: int, slab_bytes: int) -> int:
    """Number of batch rows per grid step, targeting ~_STEP_BYTES per step."""
    if slab_bytes >= _STEP_BYTES:
        return 1
    return int(min(batch, max(1, _STEP_BYTES // slab_bytes)))


def _transpose_tile_kernel(x_ref, o_ref):
    # x_ref: (tb, tl, td) tile of [B, L, D];  o_ref: (tb, td, tl) tile of [B, D, L].
    # NOTE: `.T` on a 3-D tile would reverse ALL axes -- transpose only the
    # minor two (per-batch XLU tile transpose).
    o_ref[...] = jnp.transpose(x_ref[...], (0, 2, 1))


def transpose_last_two(x):
    """Pallas equivalent of torch.transpose(x, 1, 2) for a 3-D array."""
    B, L, D = x.shape
    itemsize = jnp.dtype(x.dtype).itemsize
    cap_l, cap_d = _axis_caps(itemsize)
    tl = _pick_tile(L, cap_l)
    td = _pick_tile(D, cap_d)
    tb = _pick_batch_block(B, tl * td * itemsize)

    # Grid order (batch-blocks, D-tiles, L-tiles): innermost axis advances the
    # output's L tile -> consecutive steps write adjacent output regions.
    grid = (pl.cdiv(B, tb), pl.cdiv(D, td), pl.cdiv(L, tl))

    return pl.pallas_call(
        _transpose_tile_kernel,
        out_shape=jax.ShapeDtypeStruct((B, D, L), x.dtype),
        grid_spec=pltpu.PrefetchScalarGridSpec(
            num_scalar_prefetch=0,
            grid=grid,
            in_specs=[
                pl.BlockSpec((tb, tl, td), lambda b, d, l: (b, l, d)),
            ],
            out_specs=pl.BlockSpec((tb, td, tl), lambda b, d, l: (b, d, l)),
        ),
        compiler_params=pltpu.CompilerParams(
            # Pure copy with disjoint output blocks: every axis is parallel,
            # which lets v7x megacore shard even at small B.
            dimension_semantics=("parallel", "parallel", "parallel"),
            # Per-step block <= ~2 MiB => double-buffered in+out <= ~8 MiB,
            # within scoped-VMEM defaults on v5e/v6e/v7x (no explicit limit).
        ),
        cost_estimate=pl.CostEstimate(
            flops=0,
            transcendentals=0,
            bytes_accessed=2 * B * L * D * itemsize,
        ),
    )(x)


class TransposePallas:
    """Mirror of the PyTorch `Transpose(*dims, contiguous=...)` module."""

    def __init__(self, *dims, contiguous=False):
        self.dims = dims
        self.contiguous = contiguous  # no-op in JAX: output is always materialized

    def __call__(self, x):
        d0, d1 = self.dims
        d0 %= x.ndim
        d1 %= x.ndim
        if x.ndim == 3 and {d0, d1} == {1, 2}:
            nbytes = x.size * jnp.dtype(x.dtype).itemsize
            if nbytes < _MIN_PALLAS_BYTES:
                # Tiny activation: custom-call launch overhead dwarfs the copy,
                # and XLA can often fuse/eliminate the transpose entirely.
                return jnp.swapaxes(x, 1, 2)
            return transpose_last_two(x)
        # TODO(synk): other (rank, dims) combos fall back to plain JAX transpose.
        perm = list(range(x.ndim))
        perm[d0], perm[d1] = perm[d1], perm[d0]
        return jnp.transpose(x, perm)


if __name__ == "__main__":
    key = jax.random.PRNGKey(0)
    k1, k2, k3, k4 = jax.random.split(key, 4)

    # 1) PatchTST-style activation [bs*nvars, patch_num, d_model]:
    #    batch-blocked into a single grid step (tb=14, full L, full D).
    x1 = jax.random.normal(k1, (14, 42, 128), dtype=jnp.float32)
    y1 = jax.block_until_ready(transpose_last_two(x1))
    assert y1.shape == (14, 128, 42) and y1.dtype == x1.dtype
    assert jnp.array_equal(y1, jnp.swapaxes(x1, 1, 2)), "mismatch (PatchTST f32)"

    # 2) Ragged L > cap: tl=512 near-cap tile + one masked edge block (not 128),
    #    batch-blocked (tb=2), grid = (1, 1, 2).
    x2 = jax.random.normal(k2, (2, 640, 256), dtype=jnp.float32)
    y2 = jax.block_until_ready(transpose_last_two(x2))
    assert y2.shape == (2, 256, 640)
    assert jnp.array_equal(y2, jnp.swapaxes(x2, 1, 2)), "mismatch (ragged f32)"

    # 3) bf16 (sublane-packed dtype): byte-based caps, full-dim tiles, tb=4.
    x3 = jax.random.normal(k3, (4, 256, 192), dtype=jnp.float32).astype(jnp.bfloat16)
    y3 = jax.block_until_ready(transpose_last_two(x3))
    assert jnp.array_equal(y3, jnp.swapaxes(x3, 1, 2)), "mismatch (bf16)"

    # 4) Module-level API, matching `Transpose(1, 2, contiguous=True)` in PatchTST.
    mod = TransposePallas(1, 2, contiguous=True)
    xs = jax.random.normal(k4, (2, 8, 32), dtype=jnp.float32)
    ys = jax.block_until_ready(mod(xs))          # tiny -> XLA fallback path
    assert ys.shape == (2, 32, 8)
    assert jnp.array_equal(ys, jnp.swapaxes(xs, 1, 2)), "mismatch (module tiny)"
    y2m = jax.block_until_ready(mod(x2))         # >= 1 MiB -> Pallas path
    assert jnp.array_equal(y2m, y2), "mismatch (module pallas)"

    # 5) Non-(1,2) dims fall back to plain JAX transpose.
    mod02 = TransposePallas(0, 2)
    y02 = jax.block_until_ready(mod02(xs))
    assert jnp.array_equal(y02, jnp.transpose(xs, (2, 1, 0))), "mismatch (dims 0,2)"

    print("KERNEL_OK")
</pallas_src>

<mosaic_0001>
module attributes {stable_mosaic.version = 11 : i64} {
  func.func @_transpose_tile_kernel(%arg0: i32, %arg1: i32, %arg2: i32, %arg3: memref<14x42x128xf32, #tpu.memory_space<vmem>>, %arg4: memref<14x128x42xf32, #tpu.memory_space<vmem>>) attributes {dimension_semantics = [#tpu.dimension_semantics<parallel>, #tpu.dimension_semantics<parallel>, #tpu.dimension_semantics<parallel>], iteration_bounds = array<i64: 1, 1, 1>, scalar_prefetch = 0 : i64, scratch_operands = 0 : i64, tpu.core_type = #tpu.core_type<tc>, window_params = [{transform_indices = @transform_0, window_bounds = array<i64: 14, 42, 128>}, {transform_indices = @transform_1, window_bounds = array<i64: 14, 128, 42>}]} {
    %c0 = arith.constant 0 : index
    %c0_0 = arith.constant 0 : index
    %c0_1 = arith.constant 0 : index
    %0 = vector.load %arg3[%c0, %c0_0, %c0_1] : memref<14x42x128xf32, #tpu.memory_space<vmem>>, vector<14x42x128xf32>
    %1 = tpu.transpose %0, [0, 2, 1] : vector<14x42x128xf32> -> vector<14x128x42xf32>
    %c0_2 = arith.constant 0 : index
    %c0_3 = arith.constant 0 : index
    %c0_4 = arith.constant 0 : index
    %2 = vector.load %arg4[%c0_2, %c0_3, %c0_4] : memref<14x128x42xf32, #tpu.memory_space<vmem>>, vector<14x128x42xf32>
    tpu.vector_store %arg4[%c0_2, %c0_3, %c0_4], %1 {strides = array<i32>} : memref<14x128x42xf32, #tpu.memory_space<vmem>>, vector<14x128x42xf32>,
    return
  }
  func.func @transform_0(%arg0: i32, %arg1: i32, %arg2: i32) -> (i32, i32, i32) {
    %c0_i32 = arith.constant 0 : i32
    return %arg0, %arg2, %arg1 : i32, i32, i32
  }
  func.func @transform_1(%arg0: i32, %arg1: i32, %arg2: i32) -> (i32, i32, i32) {
    %c0_i32 = arith.constant 0 : i32
    return %arg0, %arg1, %arg2 : i32, i32, i32
  }
}

</mosaic_0001>

<bundles_post_ra>
// kernel: tpu_custom_call.1
= control target key start
LH: loop header
LB: loop body
LE: loop exit
PB: predicated region body
PF: predicated region fallthrough
CT: control target
= control target key end

     0   :  { %6 = vsyncpa [#allocation3], 0  ;;  %s812_s6 = smov [#allocation2]   ;;  %s1733_s0 = inlined_call_operand.hbm [shape: f32[14,42,128], index: 0, kind: input, shape index: {}]   ;;  %s1734_s1 = inlined_call_operand.vmem [shape: f32[14,128,42], index: 1, kind: output, shape index: {}]  }
   0x1   :  { %s12_s7 = sshll.u32 %s812_s6, 4  ;;  %s788_s10 = scalar_lea.hbm %s1733_s0, 10752  ;;  %s13_s7 = int_to_ptr.vmem [resolvable:$true] %s12_s7 }
   0x2   :  { %p789_p0 = scmp.ne.s32.totalorder %s1733_s0, %s788_s10  ;;  %p792_p1 = scmp.lt.u32.totalorder %s788_s10, %s1733_s0 }
   0x4   :  { %p794_p2 = pnand %p792_p1, %p789_p0 }
   0x6   :  { %797 = shalt.err (!%p794_p2)
}
   0x7   :  { %s798_s15 = scalar_lea.vmem %s13_s7, 10752  ;;  %p803_p4 = scmp.lt.s32.totalorder %s13_s7, %s13_s7 }
   0x8   :  { %p799_p3 = scmp.ne.s32.totalorder %s13_s7, %s798_s15  ;;  %p804_p5 = scmp.lt.s32.totalorder %s798_s15, %s798_s15 }
   0xa   :  { %p805_p6 = por %p804_p5, %p803_p4 }
   0xc   :  { %p806_p7 = pnand %p805_p6, %p799_p3 }
   0xe   :  { %809 = shalt.err (!%p806_p7)
}
   0xf   :  { %s813_s16 = smov 128   ;;  %s814_s17 = smov 8  }
  0x10   :  { %18 = dma.hbm_to_vmem [thread:$0]  %s1733_s0, 10752, %s13_s7, [#allocation3], %s813_s16, %s813_s16, %s814_s17  }
  0x11   :  { %810 = dma.done.wait [#allocation3], 10752  }
  0x12   :  { %811 = vsyncadd [#allocation3], 4294956544  ;;  %v28_v0 = vld [vmem:[#allocation2 + $0x30] sm:$0xff]  ;;  %v22_v1 = vld [vmem:[#allocation2] sm:$0xff]  ;;  %vm554_vm0 = vcmask 343040  }
  0x13   :  { %138 = vxpose.xlu1.b32.start [1/6] (short) %v28_v0, 128  ;;  %106 = vxpose.xlu0.b32.start [1/6] (short) %v22_v1, 128  ;;  %v29_v2 = vld [vmem:[#allocation2 + $0x38] sm:$0xff]  ;;  %v23_v3 = vld [vmem:[#allocation2 + $0x8] sm:$0xff]  ;;  %v30_v4 = vld [vmem:[#allocation2 + $0x40] sm:$0xff] }
  0x14   :  { %v24_v5 = vld [vmem:[#allocation2 + $0x10] sm:$0xff]  ;;  %v31_v6 = vld [vmem:[#allocation2 + $0x48] sm:$0xff]  ;;  %v25_v7 = vld [vmem:[#allocation2 + $0x18] sm:$0xff] }
  0x15   :  { %v32_v8 = vld [vmem:[#allocation2 + $0x50] sm:$0xff]  ;;  %v26_v9 = vld [vmem:[#allocation2 + $0x20] sm:$0xff]  ;;  %v33_v10 = vld [vmem:[#allocation2 + $0x58] sm:$0x3] }
  0x16   :  { %v27_v11 = vld [vmem:[#allocation2 + $0x28] sm:$0x3]  ;;  %v40_v12 = vld [vmem:[#allocation2 + $0x90] sm:$0xff]  ;;  %v34_v13 = vld [vmem:[#allocation2 + $0x60] sm:$0xff] }
  0x17   :  { %139 = vxpose.xlu1.b32.cont [2/6] (short) %v29_v2, 128  ;;  %107 = vxpose.xlu0.b32.cont [2/6] (short) %v23_v3, 128  ;;  %v41_v14 = vld [vmem:[#allocation2 + $0x98] sm:$0xff]  ;;  %v35_v15 = vld [vmem:[#allocation2 + $0x68] sm:$0xff]  ;;  %v42_v16 = vld [vmem:[#allocation2 + $0xa0] sm:$0xff] }
  0x18   :  { %v36_v17 = vld [vmem:[#allocation2 + $0x70] sm:$0xff]  ;;  %v43_v18 = vld [vmem:[#allocation2 + $0xa8] sm:$0xff]  ;;  %v37_v19 = vld [vmem:[#allocation2 + $0x78] sm:$0xff] }
  0x19   :  { %v44_v20 = vld [vmem:[#allocation2 + $0xb0] sm:$0xff]  ;;  %v38_v21 = vld [vmem:[#allocation2 + $0x80] sm:$0xff]  ;;  %v45_v22 = vld [vmem:[#allocation2 + $0xb8] sm:$0x3] }
  0x1a   :  { %v39_v23 = vld [vmem:[#allocation2 + $0x88] sm:$0x3]  ;;  %v52_v24 = vld [vmem:[#allocation2 + $0xf0] sm:$0xff]  ;;  %v46_v25 = vld [vmem:[#allocation2 + $0xc0] sm:$0xff] }
  0x1b   :  { %140 = vxpose.xlu1.b32.cont [3/6] (short) %v30_v4, 128  ;;  %108 = vxpose.xlu0.b32.cont [3/6] (short) %v24_v5, 128  ;;  %v53_v26 = vld [vmem:[#allocation2 + $0xf8] sm:$0xff]  ;;  %v47_v27 = vld [vmem:[#allocation2 + $0xc8] sm:$0xff]  ;;  %v54_v28 = vld [vmem:[#allocation2 + $0x100] sm:$0xff] }
  0x1c   :  { %v48_v29 = vld [vmem:[#allocation2 + $0xd0] sm:$0xff]  ;;  %v55_v32 = vld [vmem:[#allocation2 + $0x108] sm:$0xff]  ;;  %v49_v33 = vld [vmem:[#allocation2 + $0xd8] sm:$0xff] }
  0x1d   :  { %v56_v36 = vld [vmem:[#allocation2 + $0x110] sm:$0xff]  ;;  %v50_v37 = vld [vmem:[#allocation2 + $0xe0] sm:$0xff]  ;;  %v57_v40 = vld [vmem:[#allocation2 + $0x118] sm:$0x3] }
  0x1e   :  { %v51_v41 = vld [vmem:[#allocation2 + $0xe8] sm:$0x3]  ;;  %v64_v0 = vld [vmem:[#allocation2 + $0x150] sm:$0xff]  ;;  %v58_v1 = vld [vmem:[#allocation2 + $0x120] sm:$0xff] }
  0x1f   :  { %141 = vxpose.xlu1.b32.cont [4/6] (short) %v31_v6, 128  ;;  %109 = vxpose.xlu0.b32.cont [4/6] (short) %v25_v7, 128  ;;  %v65_v4 = vld [vmem:[#allocation2 + $0x158] sm:$0xff]  ;;  %v59_v5 = vld [vmem:[#allocation2 + $0x128] sm:$0xff] }
  0x23   :  { %142 = vxpose.xlu1.b32.cont [5/6] (short) %v32_v8, 128  ;;  %110 = vxpose.xlu0.b32.cont [5/6] (short) %v26_v9, 128  ;;  %v66_v8 = vld [vmem:[#allocation2 + $0x160] sm:$0xff]  ;;  %v60_v9 = vld [vmem:[#allocation2 + $0x130] sm:$0xff] }
  0x27   :  { %143 = vxpose.xlu1.b32.end [6/6] (short) %v33_v10, 128  ;;  %111 = vxpose.xlu0.b32.end [6/6] (short) %v27_v11, 128 }
  0x50   :  { %202 = vxpose.xlu1.b32.start [1/6] (short) %v40_v12, 128  ;;  %170 = vxpose.xlu0.b32.start [1/6] (short) %v34_v13, 128  ;;  %v67_v12 = vld [vmem:[#allocation2 + $0x168] sm:$0xff]  ;;  %v61_v13 = vld [vmem:[#allocation2 + $0x138] sm:$0xff] }
  0x54   :  { %203 = vxpose.xlu1.b32.cont [2/6] (short) %v41_v14, 128  ;;  %171 = vxpose.xlu0.b32.cont [2/6] (short) %v35_v15, 128 }
  0x58   :  { %204 = vxpose.xlu1.b32.cont [3/6] (short) %v42_v16, 128  ;;  %172 = vxpose.xlu0.b32.cont [3/6] (short) %v36_v17, 128  ;;  %v68_v16 = vld [vmem:[#allocation2 + $0x170] sm:$0xff]  ;;  %v62_v17 = vld [vmem:[#allocation2 + $0x140] sm:$0xff] }
  0x5c   :  { %205 = vxpose.xlu1.b32.cont [4/6] (short) %v43_v18, 128  ;;  %173 = vxpose.xlu0.b32.cont [4/6] (short) %v37_v19, 128 }
  0x60   :  { %206 = vxpose.xlu1.b32.cont [5/6] (short) %v44_v20, 128  ;;  %174 = vxpose.xlu0.b32.cont [5/6] (short) %v38_v21, 128  ;;  %v69_v20 = vld [vmem:[#allocation2 + $0x178] sm:$0x3]  ;;  %v63_v21 = vld [vmem:[#allocation2 + $0x148] sm:$0x3] }
  0x64   :  { %207 = vxpose.xlu1.b32.end [6/6] (short) %v45_v22, 128  ;;  %175 = vxpose.xlu0.b32.end [6/6] (short) %v39_v23, 128 }
  0x8d   :  { %266 = vxpose.xlu1.b32.start [1/6] (short) %v52_v24, 128  ;;  %234 = vxpose.xlu0.b32.start [1/6] (short) %v46_v25, 128 }
  0x91   :  { %267 = vxpose.xlu1.b32.cont [2/6] (short) %v53_v26, 128  ;;  %235 = vxpose.xlu0.b32.cont [2/6] (short) %v47_v27, 128 }
  0x93   :  { %v154_v30 = vpop.trf.xlu1  ;;  %v122_v31 = vpop.trf.xlu0 }
  0x94   :  { %571 = vst.msk [vmem:[%s1734_s1 + $0x80] sm:$0xff] %vm554_vm0, %v154_v30  ;;  %555 = vst.msk [vmem:[%s1734_s1] sm:$0xff] %vm554_vm0, %v122_v31 }
  0x95   :  { %268 = vxpose.xlu1.b32.cont [3/6] (short) %v54_v28, 128  ;;  %236 = vxpose.xlu0.b32.cont [3/6] (short) %v48_v29, 128 }
  0x97   :  { %v155_v34 = vpop.trf.xlu1  ;;  %v123_v35 = vpop.trf.xlu0 }
  0x98   :  { %572 = vst.msk [vmem:[%s1734_s1 + $0x88] sm:$0xff] %vm554_vm0, %v155_v34  ;;  %556 = vst.msk [vmem:[%s1734_s1 + $0x8] sm:$0xff] %vm554_vm0, %v123_v35 }
  0x99   :  { %269 = vxpose.xlu1.b32.cont [4/6] (short) %v55_v32, 128  ;;  %237 = vxpose.xlu0.b32.cont [4/6] (short) %v49_v33, 128 }
  0x9b   :  { %v156_v38 = vpop.trf.xlu1  ;;  %v124_v39 = vpop.trf.xlu0 }
  0x9c   :  { %573 = vst.msk [vmem:[%s1734_s1 + $0x90] sm:$0xff] %vm554_vm0, %v156_v38  ;;  %557 = vst.msk [vmem:[%s1734_s1 + $0x10] sm:$0xff] %vm554_vm0, %v124_v39 }
  0x9d   :  { %270 = vxpose.xlu1.b32.cont [5/6] (short) %v56_v36, 128  ;;  %238 = vxpose.xlu0.b32.cont [5/6] (short) %v50_v37, 128 }
  0x9f   :  { %v157_v42 = vpop.trf.xlu1  ;;  %v125_v43 = vpop.trf.xlu0 }
  0xa0   :  { %574 = vst.msk [vmem:[%s1734_s1 + $0x98] sm:$0xff] %vm554_vm0, %v157_v42  ;;  %558 = vst.msk [vmem:[%s1734_s1 + $0x18] sm:$0xff] %vm554_vm0, %v125_v43 }
  0xa1   :  { %271 = vxpose.xlu1.b32.end [6/6] (short) %v57_v40, 128  ;;  %239 = vxpose.xlu0.b32.end [6/6] (short) %v51_v41, 128 }
  0xa3   :  { %v158_v44 = vpop.trf.xlu1  ;;  %v126_v45 = vpop.trf.xlu0 }
  0xa4   :  { %575 = vst.msk [vmem:[%s1734_s1 + $0xa0] sm:$0xff] %vm554_vm0, %v158_v44  ;;  %559 = vst.msk [vmem:[%s1734_s1 + $0x20] sm:$0xff] %vm554_vm0, %v126_v45  ;;  %v76_v44 = vld [vmem:[#allocation2 + $0x1b0] sm:$0xff]  ;;  %v70_v45 = vld [vmem:[#allocation2 + $0x180] sm:$0xff] }
  0xa7   :  { %v159_v46 = vpop.trf.xlu1  ;;  %v127_v47 = vpop.trf.xlu0 }
  0xa8   :  { %576 = vst.msk [vmem:[%s1734_s1 + $0xa8] sm:$0xff] %vm554_vm0, %v159_v46  ;;  %560 = vst.msk [vmem:[%s1734_s1 + $0x28] sm:$0xff] %vm554_vm0, %v127_v47 }
  0xab   :  { %v160_v48 = vpop.trf.xlu1  ;;  %v128_v49 = vpop.trf.xlu0 }
  0xac   :  { %577 = vst.msk [vmem:[%s1734_s1 + $0xb0] sm:$0xff] %vm554_vm0, %v160_v48  ;;  %561 = vst.msk [vmem:[%s1734_s1 + $0x30] sm:$0xff] %vm554_vm0, %v128_v49  ;;  %v77_v48 = vld [vmem:[#allocation2 + $0x1b8] sm:$0xff]  ;;  %v71_v49 = vld [vmem:[#allocation2 + $0x188] sm:$0xff] }
  0xaf   :  { %v161_v50 = vpop.trf.xlu1  ;;  %v129_v51 = vpop.trf.xlu0 }
  0xb0   :  { %578 = vst.msk [vmem:[%s1734_s1 + $0xb8] sm:$0xff] %vm554_vm0, %v161_v50  ;;  %562 = vst.msk [vmem:[%s1734_s1 + $0x38] sm:$0xff] %vm554_vm0, %v129_v51 }
  0xb3   :  { %v162_v52 = vpop.trf.xlu1  ;;  %v130_v53 = vpop.trf.xlu0 }
  0xb4   :  { %579 = vst.msk [vmem:[%s1734_s1 + $0xc0] sm:$0xff] %vm554_vm0, %v162_v52  ;;  %563 = vst.msk [vmem:[%s1734_s1 + $0x40] sm:$0xff] %vm554_vm0, %v130_v53  ;;  %v78_v52 = vld [vmem:[#allocation2 + $0x1c0] sm:$0xff]  ;;  %v72_v53 = vld [vmem:[#allocation2 + $0x190] sm:$0xff] }
  0xb7   :  { %v163_v54 = vpop.trf.xlu1  ;;  %v131_v55 = vpop.trf.xlu0 }
  0xb8   :  { %580 = vst.msk [vmem:[%s1734_s1 + $0xc8] sm:$0xff] %vm554_vm0, %v163_v54  ;;  %564 = vst.msk [vmem:[%s1734_s1 + $0x48] sm:$0xff] %vm554_vm0, %v131_v55 }
  0xbb   :  { %v164_v56 = vpop.trf.xlu1  ;;  %v132_v57 = vpop.trf.xlu0 }
  0xbc   :  { %581 = vst.msk [vmem:[%s1734_s1 + $0xd0] sm:$0xff] %vm554_vm0, %v164_v56  ;;  %565 = vst.msk [vmem:[%s1734_s1 + $0x50] sm:$0xff] %vm554_vm0, %v132_v57  ;;  %v79_v56 = vld [vmem:[#allocation2 + $0x1c8] sm:$0xff]  ;;  %v73_v57 = vld [vmem:[#allocation2 + $0x198] sm:$0xff] }
  0xbf   :  { %v165_v58 = vpop.trf.xlu1  ;;  %v133_v59 = vpop.trf.xlu0 }
  0xc0   :  { %582 = vst.msk [vmem:[%s1734_s1 + $0xd8] sm:$0xff] %vm554_vm0, %v165_v58  ;;  %566 = vst.msk [vmem:[%s1734_s1 + $0x58] sm:$0xff] %vm554_vm0, %v133_v59 }
  0xc3   :  { %v166_v60 = vpop.trf.xlu1  ;;  %v134_v61 = vpop.trf.xlu0 }
  0xc4   :  { %583 = vst.msk [vmem:[%s1734_s1 + $0xe0] sm:$0xff] %vm554_vm0, %v166_v60  ;;  %567 = vst.msk [vmem:[%s1734_s1 + $0x60] sm:$0xff] %vm554_vm0, %v134_v61  ;;  %v80_v60 = vld [vmem:[#allocation2 + $0x1d0] sm:$0xff]  ;;  %v74_v61 = vld [vmem:[#allocation2 + $0x1a0] sm:$0xff] }
  0xc7   :  { %v167_v62 = vpop.trf.xlu1  ;;  %v135_v63 = vpop.trf.xlu0 }
  0xc8   :  { %584 = vst.msk [vmem:[%s1734_s1 + $0xe8] sm:$0xff] %vm554_vm0, %v167_v62  ;;  %568 = vst.msk [vmem:[%s1734_s1 + $0x68] sm:$0xff] %vm554_vm0, %v135_v63 }
  0xcb   :  { %v168_v2 = vpop.trf.xlu1  ;;  %v136_v3 = vpop.trf.xlu0  ;;  %330 = vxpose.xlu1.b32.start [1/6] (short) %v64_v0, 128  ;;  %298 = vxpose.xlu0.b32.start [1/6] (short) %v58_v1, 128  ;;  %v81_v0 = vld [vmem:[#allocation2 + $0x1d8] sm:$0x3]  ;;  %v75_v1 = vld [vmem:[#allocation2 + $0x1a8] sm:$0x3] }
  0xcc   :  { %585 = vst.msk [vmem:[%s1734_s1 + $0xf0] sm:$0xff] %vm554_vm0, %v168_v2  ;;  %569 = vst.msk [vmem:[%s1734_s1 + $0x70] sm:$0xff] %vm554_vm0, %v136_v3 }
  0xcf   :  { %v169_v6 = vpop.trf.xlu1  ;;  %v137_v7 = vpop.trf.xlu0  ;;  %331 = vxpose.xlu1.b32.cont [2/6] (short) %v65_v4, 128  ;;  %299 = vxpose.xlu0.b32.cont [2/6] (short) %v59_v5, 128 }
  0xd0   :  { %586 = vst.msk [vmem:[%s1734_s1 + $0xf8] sm:$0xff] %vm554_vm0, %v169_v6  ;;  %570 = vst.msk [vmem:[%s1734_s1 + $0x78] sm:$0xff] %vm554_vm0, %v137_v7 }
  0xd3   :  { %v218_v10 = vpop.trf.xlu1  ;;  %v186_v11 = vpop.trf.xlu0  ;;  %332 = vxpose.xlu1.b32.cont [3/6] (short) %v66_v8, 128  ;;  %300 = vxpose.xlu0.b32.cont [3/6] (short) %v60_v9, 128 }
  0xd4   :  { %603 = vst.msk [vmem:[%s1734_s1 + $0x180] sm:$0xff] %vm554_vm0, %v218_v10  ;;  %587 = vst.msk [vmem:[%s1734_s1 + $0x100] sm:$0xff] %vm554_vm0, %v186_v11 }
  0xd7   :  { %v219_v14 = vpop.trf.xlu1  ;;  %v187_v15 = vpop.trf.xlu0  ;;  %333 = vxpose.xlu1.b32.cont [4/6] (short) %v67_v12, 128  ;;  %301 = vxpose.xlu0.b32.cont [4/6] (short) %v61_v13, 128 }
  0xd8   :  { %604 = vst.msk [vmem:[%s1734_s1 + $0x188] sm:$0xff] %vm554_vm0, %v219_v14  ;;  %588 = vst.msk [vmem:[%s1734_s1 + $0x108] sm:$0xff] %vm554_vm0, %v187_v15 }
  0xdb   :  { %v220_v18 = vpop.trf.xlu1  ;;  %v188_v19 = vpop.trf.xlu0  ;;  %334 = vxpose.xlu1.b32.cont [5/6] (short) %v68_v16, 128  ;;  %302 = vxpose.xlu0.b32.cont [5/6] (short) %v62_v17, 128 }
  0xdc   :  { %605 = vst.msk [vmem:[%s1734_s1 + $0x190] sm:$0xff] %vm554_vm0, %v220_v18  ;;  %589 = vst.msk [vmem:[%s1734_s1 + $0x110] sm:$0xff] %vm554_vm0, %v188_v19 }
  0xdf   :  { %v221_v22 = vpop.trf.xlu1  ;;  %v189_v23 = vpop.trf.xlu0  ;;  %335 = vxpose.xlu1.b32.end [6/6] (short) %v69_v20, 128  ;;  %303 = vxpose.xlu0.b32.end [6/6] (short) %v63_v21, 128 }
  0xe0   :  { %606 = vst.msk [vmem:[%s1734_s1 + $0x198] sm:$0xff] %vm554_vm0, %v221_v22  ;;  %590 = vst.msk [vmem:[%s1734_s1 + $0x118] sm:$0xff] %vm554_vm0, %v189_v23 }
  0xe3   :  { %v222_v24 = vpop.trf.xlu1  ;;  %v190_v25 = vpop.trf.xlu0 }
  0xe4   :  { %607 = vst.msk [vmem:[%s1734_s1 + $0x1a0] sm:$0xff] %vm554_vm0, %v222_v24  ;;  %591 = vst.msk [vmem:[%s1734_s1 + $0x120] sm:$0xff] %vm554_vm0, %v190_v25  ;;  %v88_v24 = vld [vmem:[#allocation2 + $0x210] sm:$0xff]  ;;  %v82_v25 = vld [vmem:[#allocation2 + $0x1e0] sm:$0xff] }
  0xe7   :  { %v223_v26 = vpop.trf.xlu1  ;;  %v191_v27 = vpop.trf.xlu0 }
  0xe8   :  { %608 = vst.msk [vmem:[%s1734_s1 + $0x1a8] sm:$0xff] %vm554_vm0, %v223_v26  ;;  %592 = vst.msk [vmem:[%s1734_s1 + $0x128] sm:$0xff] %vm554_vm0, %v191_v27 }
  0xeb   :  { %v224_v28 = vpop.trf.xlu1  ;;  %v192_v29 = vpop.trf.xlu0 }
  0xec   :  { %609 = vst.msk [vmem:[%s1734_s1 + $0x1b0] sm:$0xff] %vm554_vm0, %v224_v28  ;;  %593 = vst.msk [vmem:[%s1734_s1 + $0x130] sm:$0xff] %vm554_vm0, %v192_v29  ;;  %v89_v28 = vld [vmem:[#allocation2 + $0x218] sm:$0xff]  ;;  %v83_v29 = vld [vmem:[#allocation2 + $0x1e8] sm:$0xff] }
  0xef   :  { %v225_v30 = vpop.trf.xlu1  ;;  %v193_v31 = vpop.trf.xlu0 }
  0xf0   :  { %610 = vst.msk [vmem:[%s1734_s1 + $0x1b8] sm:$0xff] %vm554_vm0, %v225_v30  ;;  %594 = vst.msk [vmem:[%s1734_s1 + $0x138] sm:$0xff] %vm554_vm0, %v193_v31 }
  0xf3   :  { %v226_v32 = vpop.trf.xlu1  ;;  %v194_v33 = vpop.trf.xlu0 }
  0xf4   :  { %611 = vst.msk [vmem:[%s1734_s1 + $0x1c0] sm:$0xff] %vm554_vm0, %v226_v32  ;;  %595 = vst.msk [vmem:[%s1734_s1 + $0x140] sm:$0xff] %vm554_vm0, %v194_v33  ;;  %v90_v32 = vld [vmem:[#allocation2 + $0x220] sm:$0xff]  ;;  %v84_v33 = vld [vmem:[#allocation2 + $0x1f0] sm:$0xff] }
  0xf7   :  { %v227_v34 = vpop.trf.xlu1  ;;  %v195_v35 = vpop.trf.xlu0 }
  0xf8   :  { %612 = vst.msk [vmem:[%s1734_s1 + $0x1c8] sm:$0xff] %vm554_vm0, %v227_v34  ;;  %596 = vst.msk [vmem:[%s1734_s1 + $0x148] sm:$0xff] %vm554_vm0, %v195_v35 }
  0xfb   :  { %v228_v36 = vpop.trf.xlu1  ;;  %v196_v37 = vpop.trf.xlu0 }
  0xfc   :  { %613 = vst.msk [vmem:[%s1734_s1 + $0x1d0] sm:$0xff] %vm554_vm0, %v228_v36  ;;  %597 = vst.msk [vmem:[%s1734_s1 + $0x150] sm:$0xff] %vm554_vm0, %v196_v37  ;;  %v91_v36 = vld [vmem:[#allocation2 + $0x228] sm:$0xff]  ;;  %v85_v37 = vld [vmem:[#allocation2 + $0x1f8] sm:$0xff] }
  0xff   :  { %v229_v38 = vpop.trf.xlu1  ;;  %v197_v39 = vpop.trf.xlu0 }
 0x100   :  { %614 = vst.msk [vmem:[%s1734_s1 + $0x1d8] sm:$0xff] %vm554_vm0, %v229_v38  ;;  %598 = vst.msk [vmem:[%s1734_s1 + $0x158] sm:$0xff] %vm554_vm0, %v197_v39 }
 0x103   :  { %v230_v40 = vpop.trf.xlu1  ;;  %v198_v41 = vpop.trf.xlu0 }
 0x104   :  { %615 = vst.msk [vmem:[%s1734_s1 + $0x1e0] sm:$0xff] %vm554_vm0, %v230_v40  ;;  %599 = vst.msk [vmem:[%s1734_s1 + $0x160] sm:$0xff] %vm554_vm0, %v198_v41  ;;  %v92_v40 = vld [vmem:[#allocation2 + $0x230] sm:$0xff]  ;;  %v86_v41 = vld [vmem:[#allocation2 + $0x200] sm:$0xff] }
 0x107   :  { %v231_v42 = vpop.trf.xlu1  ;;  %v199_v43 = vpop.trf.xlu0 }
 0x108   :  { %616 = vst.msk [vmem:[%s1734_s1 + $0x1e8] sm:$0xff] %vm554_vm0, %v231_v42  ;;  %600 = vst.msk [vmem:[%s1734_s1 + $0x168] sm:$0xff] %vm554_vm0, %v199_v43 }
 0x10b   :  { %v232_v46 = vpop.trf.xlu1  ;;  %v200_v47 = vpop.trf.xlu0  ;;  %394 = vxpose.xlu1.b32.start [1/6] (short) %v76_v44, 128  ;;  %362 = vxpose.xlu0.b32.start [1/6] (short) %v70_v45, 128  ;;  %v93_v44 = vld [vmem:[#allocation2 + $0x238] sm:$0x3]  ;;  %v87_v45 = vld [vmem:[#allocation2 + $0x208] sm:$0x3] }
 0x10c   :  { %617 = vst.msk [vmem:[%s1734_s1 + $0x1f0] sm:$0xff] %vm554_vm0, %v232_v46  ;;  %601 = vst.msk [vmem:[%s1734_s1 + $0x170] sm:$0xff] %vm554_vm0, %v200_v47 }
 0x10f   :  { %v233_v50 = vpop.trf.xlu1  ;;  %v201_v51 = vpop.trf.xlu0  ;;  %395 = vxpose.xlu1.b32.cont [2/6] (short) %v77_v48, 128  ;;  %363 = vxpose.xlu0.b32.cont [2/6] (short) %v71_v49, 128 }
 0x110   :  { %618 = vst.msk [vmem:[%s1734_s1 + $0x1f8] sm:$0xff] %vm554_vm0, %v233_v50  ;;  %602 = vst.msk [vmem:[%s1734_s1 + $0x178] sm:$0xff] %vm554_vm0, %v201_v51 }
 0x113   :  { %v282_v54 = vpop.trf.xlu1  ;;  %v250_v55 = vpop.trf.xlu0  ;;  %396 = vxpose.xlu1.b32.cont [3/6] (short) %v78_v52, 128  ;;  %364 = vxpose.xlu0.b32.cont [3/6] (short) %v72_v53, 128 }
 0x114   :  { %635 = vst.msk [vmem:[%s1734_s1 + $0x280] sm:$0xff] %vm554_vm0, %v282_v54  ;;  %619 = vst.msk [vmem:[%s1734_s1 + $0x200] sm:$0xff] %vm554_vm0, %v250_v55 }
 0x117   :  { %v283_v58 = vpop.trf.xlu1  ;;  %v251_v59 = vpop.trf.xlu0  ;;  %397 = vxpose.xlu1.b32.cont [4/6] (short) %v79_v56, 128  ;;  %365 = vxpose.xlu0.b32.cont [4/6] (short) %v73_v57, 128 }
 0x118   :  { %636 = vst.msk [vmem:[%s1734_s1 + $0x288] sm:$0xff] %vm554_vm0, %v283_v58  ;;  %620 = vst.msk [vmem:[%s1734_s1 + $0x208] sm:$0xff] %vm554_vm0, %v251_v59 }
 0x11b   :  { %v284_v62 = vpop.trf.xlu1  ;;  %v252_v63 = vpop.trf.xlu0  ;;  %398 = vxpose.xlu1.b32.cont [5/6] (short) %v80_v60, 128  ;;  %366 = vxpose.xlu0.b32.cont [5/6] (short) %v74_v61, 128 }
 0x11c   :  { %637 = vst.msk [vmem:[%s1734_s1 + $0x290] sm:$0xff] %vm554_vm0, %v284_v62  ;;  %621 = vst.msk [vmem:[%s1734_s1 + $0x210] sm:$0xff] %vm554_vm0, %v252_v63 }
 0x11f   :  { %v285_v2 = vpop.trf.xlu1  ;;  %v253_v3 = vpop.trf.xlu0  ;;  %399 = vxpose.xlu1.b32.end [6/6] (short) %v81_v0, 128  ;;  %367 = vxpose.xlu0.b32.end [6/6] (short) %v75_v1, 128 }
 0x120   :  { %638 = vst.msk [vmem:[%s1734_s1 + $0x298] sm:$0xff] %vm554_vm0, %v285_v2  ;;  %622 = vst.msk [vmem:[%s1734_s1 + $0x218] sm:$0xff] %vm554_vm0, %v253_v3 }
 0x123   :  { %v286_v4 = vpop.trf.xlu1  ;;  %v254_v5 = vpop.trf.xlu0 }
 0x124   :  { %639 = vst.msk [vmem:[%s1734_s1 + $0x2a0] sm:$0xff] %vm554_vm0, %v286_v4  ;;  %623 = vst.msk [vmem:[%s1734_s1 + $0x220] sm:$0xff] %vm554_vm0, %v254_v5  ;;  %v100_v4 = vld [vmem:[#allocation2 + $0x270] sm:$0xff]  ;;  %v94_v5 = vld [vmem:[#allocation2 + $0x240] sm:$0xff] }
 0x127   :  { %v287_v6 = vpop.trf.xlu1  ;;  %v255_v7 = vpop.trf.xlu0 }
 0x128   :  { %640 = vst.msk [vmem:[%s1734_s1 + $0x2a8] sm:$0xff] %vm554_vm0, %v287_v6  ;;  %624 = vst.msk [vmem:[%s1734_s1 + $0x228] sm:$0xff] %vm554_vm0, %v255_v7 }
 0x12b   :  { %v288_v8 = vpop.trf.xlu1  ;;  %v256_v9 = vpop.trf.xlu0 }
 0x12c   :  { %641 = vst.msk [vmem:[%s1734_s1 + $0x2b0] sm:$0xff] %vm554_vm0, %v288_v8  ;;  %625 = vst.msk [vmem:[%s1734_s1 + $0x230] sm:$0xff] %vm554_vm0, %v256_v9  ;;  %v101_v8 = vld [vmem:[#allocation2 + $0x278] sm:$0xff]  ;;  %v95_v9 = vld [vmem:[#allocation2 + $0x248] sm:$0xff] }
 0x12f   :  { %v289_v10 = vpop.trf.xlu1  ;;  %v257_v11 = vpop.trf.xlu0 }
 0x130   :  { %642 = vst.msk [vmem:[%s1734_s1 + $0x2b8] sm:$0xff] %vm554_vm0, %v289_v10  ;;  %626 = vst.msk [vmem:[%s1734_s1 + $0x238] sm:$0xff] %vm554_vm0, %v257_v11 }
 0x133   :  { %v290_v12 = vpop.trf.xlu1  ;;  %v258_v13 = vpop.trf.xlu0 }
 0x134   :  { %643 = vst.msk [vmem:[%s1734_s1 + $0x2c0] sm:$0xff] %vm554_vm0, %v290_v12  ;;  %627 = vst.msk [vmem:[%s1734_s1 + $0x240] sm:$0xff] %vm554_vm0, %v258_v13  ;;  %v102_v12 = vld [vmem:[#allocation2 + $0x280] sm:$0xff]  ;;  %v96_v13 = vld [vmem:[#allocation2 + $0x250] sm:$0xff] }
 0x137   :  { %v291_v14 = vpop.trf.xlu1  ;;  %v259_v15 = vpop.trf.xlu0 }
 0x138   :  { %644 = vst.msk [vmem:[%s1734_s1 + $0x2c8] sm:$0xff] %vm554_vm0, %v291_v14  ;;  %628 = vst.msk [vmem:[%s1734_s1 + $0x248] sm:$0xff] %vm554_vm0, %v259_v15 }
 0x13b   :  { %v292_v16 = vpop.trf.xlu1  ;;  %v260_v17 = vpop.trf.xlu0 }
 0x13c   :  { %645 = vst.msk [vmem:[%s1734_s1 + $0x2d0] sm:$0xff] %vm554_vm0, %v292_v16  ;;  %629 = vst.msk [vmem:[%s1734_s1 + $0x250] sm:$0xff] %vm554_vm0, %v260_v17  ;;  %v103_v16 = vld [vmem:[#allocation2 + $0x288] sm:$0xff]  ;;  %v97_v17 = vld [vmem:[#allocation2 + $0x258] sm:$0xff] }
 0x13f   :  { %v293_v18 = vpop.trf.xlu1  ;;  %v261_v19 = vpop.trf.xlu0 }
 0x140   :  { %646 = vst.msk [vmem:[%s1734_s1 + $0x2d8] sm:$0xff] %vm554_vm0, %v293_v18  ;;  %630 = vst.msk [vmem:[%s1734_s1 + $0x258] sm:$0xff] %vm554_vm0, %v261_v19 }
 0x143   :  { %v294_v20 = vpop.trf.xlu1  ;;  %v262_v21 = vpop.trf.xlu0 }
 0x144   :  { %647 = vst.msk [vmem:[%s1734_s1 + $0x2e0] sm:$0xff] %vm554_vm0, %v294_v20  ;;  %631 = vst.msk [vmem:[%s1734_s1 + $0x260] sm:$0xff] %vm554_vm0, %v262_v21  ;;  %v104_v20 = vld [vmem:[#allocation2 + $0x290] sm:$0xff]  ;;  %v98_v21 = vld [vmem:[#allocation2 + $0x260] sm:$0xff] }
 0x147   :  { %v295_v22 = vpop.trf.xlu1  ;;  %v263_v23 = vpop.trf.xlu0 }
 0x148   :  { %648 = vst.msk [vmem:[%s1734_s1 + $0x2e8] sm:$0xff] %vm554_vm0, %v295_v22  ;;  %632 = vst.msk [vmem:[%s1734_s1 + $0x268] sm:$0xff] %vm554_vm0, %v263_v23 }
 0x14b   :  { %v296_v26 = vpop.trf.xlu1  ;;  %v264_v27 = vpop.trf.xlu0  ;;  %458 = vxpose.xlu1.b32.start [1/6] (short) %v88_v24, 128  ;;  %426 = vxpose.xlu0.b32.start [1/6] (short) %v82_v25, 128  ;;  %v105_v24 = vld [vmem:[#allocation2 + $0x298] sm:$0x3]  ;;  %v99_v25 = vld [vmem:[#allocation2 + $0x268] sm:$0x3] }
 0x14c   :  { %649 = vst.msk [vmem:[%s1734_s1 + $0x2f0] sm:$0xff] %vm554_vm0, %v296_v26  ;;  %633 = vst.msk [vmem:[%s1734_s1 + $0x270] sm:$0xff] %vm554_vm0, %v264_v27 }
 0x14f   :  { %v297_v30 = vpop.trf.xlu1  ;;  %v265_v31 = vpop.trf.xlu0  ;;  %459 = vxpose.xlu1.b32.cont [2/6] (short) %v89_v28, 128  ;;  %427 = vxpose.xlu0.b32.cont [2/6] (short) %v83_v29, 128 }
 0x150   :  { %650 = vst.msk [vmem:[%s1734_s1 + $0x2f8] sm:$0xff] %vm554_vm0, %v297_v30  ;;  %634 = vst.msk [vmem:[%s1734_s1 + $0x278] sm:$0xff] %vm554_vm0, %v265_v31 }
 0x153   :  { %v346_v34 = vpop.trf.xlu1  ;;  %v314_v35 = vpop.trf.xlu0  ;;  %460 = vxpose.xlu1.b32.cont [3/6] (short) %v90_v32, 128  ;;  %428 = vxpose.xlu0.b32.cont [3/6] (short) %v84_v33, 128 }
 0x154   :  { %667 = vst.msk [vmem:[%s1734_s1 + $0x380] sm:$0xff] %vm554_vm0, %v346_v34  ;;  %651 = vst.msk [vmem:[%s1734_s1 + $0x300] sm:$0xff] %vm554_vm0, %v314_v35 }
 0x157   :  { %v347_v38 = vpop.trf.xlu1  ;;  %v315_v39 = vpop.trf.xlu0  ;;  %461 = vxpose.xlu1.b32.cont [4/6] (short) %v91_v36, 128  ;;  %429 = vxpose.xlu0.b32.cont [4/6] (short) %v85_v37, 128 }
 0x158   :  { %668 = vst.msk [vmem:[%s1734_s1 + $0x388] sm:$0xff] %vm554_vm0, %v347_v38  ;;  %652 = vst.msk [vmem:[%s1734_s1 + $0x308] sm:$0xff] %vm554_vm0, %v315_v39 }
 0x15b   :  { %v348_v42 = vpop.trf.xlu1  ;;  %v316_v43 = vpop.trf.xlu0  ;;  %462 = vxpose.xlu1.b32.cont [5/6] (short) %v92_v40, 128  ;;  %430 = vxpose.xlu0.b32.cont [5/6] (short) %v86_v41, 128 }
 0x15c   :  { %669 = vst.msk [vmem:[%s1734_s1 + $0x390] sm:$0xff] %vm554_vm0, %v348_v42  ;;  %653 = vst.msk [vmem:[%s1734_s1 + $0x310] sm:$0xff] %vm554_vm0, %v316_v43 }
 0x15f   :  { %v349_v46 = vpop.trf.xlu1  ;;  %v317_v47 = vpop.trf.xlu0  ;;  %463 = vxpose.xlu1.b32.end [6/6] (short) %v93_v44, 128  ;;  %431 = vxpose.xlu0.b32.end [6/6] (short) %v87_v45, 128 }
 0x160   :  { %670 = vst.msk [vmem:[%s1734_s1 + $0x398] sm:$0xff] %vm554_vm0, %v349_v46  ;;  %654 = vst.msk [vmem:[%s1734_s1 + $0x318] sm:$0xff] %vm554_vm0, %v317_v47 }
 0x163   :  { %v350_v48 = vpop.trf.xlu1  ;;  %v318_v49 = vpop.trf.xlu0 }
 0x164   :  { %671 = vst.msk [vmem:[%s1734_s1 + $0x3a0] sm:$0xff] %vm554_vm0, %v350_v48  ;;  %655 = vst.msk [vmem:[%s1734_s1 + $0x320] sm:$0xff] %vm554_vm0, %v318_v49 }
 0x167   :  { %v351_v50 = vpop.trf.xlu1  ;;  %v319_v51 = vpop.trf.xlu0 }
 0x168   :  { %672 = vst.msk [vmem:[%s1734_s1 + $0x3a8] sm:$0xff] %vm554_vm0, %v351_v50  ;;  %656 = vst.msk [vmem:[%s1734_s1 + $0x328] sm:$0xff] %vm554_vm0, %v319_v51 }
 0x16b   :  { %v352_v52 = vpop.trf.xlu1  ;;  %v320_v53 = vpop.trf.xlu0 }
 0x16c   :  { %673 = vst.msk [vmem:[%s1734_s1 + $0x3b0] sm:$0xff] %vm554_vm0, %v352_v52  ;;  %657 = vst.msk [vmem:[%s1734_s1 + $0x330] sm:$0xff] %vm554_vm0, %v320_v53 }
 0x16f   :  { %v353_v54 = vpop.trf.xlu1  ;;  %v321_v55 = vpop.trf.xlu0 }
 0x170   :  { %674 = vst.msk [vmem:[%s1734_s1 + $0x3b8] sm:$0xff] %vm554_vm0, %v353_v54  ;;  %658 = vst.msk [vmem:[%s1734_s1 + $0x338] sm:$0xff] %vm554_vm0, %v321_v55 }
 0x173   :  { %v354_v56 = vpop.trf.xlu1  ;;  %v322_v57 = vpop.trf.xlu0 }
 0x174   :  { %675 = vst.msk [vmem:[%s1734_s1 + $0x3c0] sm:$0xff] %vm554_vm0, %v354_v56  ;;  %659 = vst.msk [vmem:[%s1734_s1 + $0x340] sm:$0xff] %vm554_vm0, %v322_v57 }
 0x177   :  { %v355_v58 = vpop.trf.xlu1  ;;  %v323_v59 = vpop.trf.xlu0 }
 0x178   :  { %676 = vst.msk [vmem:[%s1734_s1 + $0x3c8] sm:$0xff] %vm554_vm0, %v355_v58  ;;  %660 = vst.msk [vmem:[%s1734_s1 + $0x348] sm:$0xff] %vm554_vm0, %v323_v59 }
 0x17b   :  { %v356_v60 = vpop.trf.xlu1  ;;  %v324_v61 = vpop.trf.xlu0 }
 0x17c   :  { %677 = vst.msk [vmem:[%s1734_s1 + $0x3d0] sm:$0xff] %vm554_vm0, %v356_v60  ;;  %661 = vst.msk [vmem:[%s1734_s1 + $0x350] sm:$0xff] %vm554_vm0, %v324_v61 }
 0x17f   :  { %v357_v62 = vpop.trf.xlu1  ;;  %v325_v63 = vpop.trf.xlu0 }
 0x180   :  { %678 = vst.msk [vmem:[%s1734_s1 + $0x3d8] sm:$0xff] %vm554_vm0, %v357_v62  ;;  %662 = vst.msk [vmem:[%s1734_s1 + $0x358] sm:$0xff] %vm554_vm0, %v325_v63 }
 0x183   :  { %v358_v0 = vpop.trf.xlu1  ;;  %v326_v1 = vpop.trf.xlu0 }
 0x184   :  { %679 = vst.msk [vmem:[%s1734_s1 + $0x3e0] sm:$0xff] %vm554_vm0, %v358_v0  ;;  %663 = vst.msk [vmem:[%s1734_s1 + $0x360] sm:$0xff] %vm554_vm0, %v326_v1 }
 0x187   :  { %v359_v2 = vpop.trf.xlu1  ;;  %v327_v3 = vpop.trf.xlu0 }
 0x188   :  { %680 = vst.msk [vmem:[%s1734_s1 + $0x3e8] sm:$0xff] %vm554_vm0, %v359_v2  ;;  %664 = vst.msk [vmem:[%s1734_s1 + $0x368] sm:$0xff] %vm554_vm0, %v327_v3 }
 0x18b   :  { %v360_v6 = vpop.trf.xlu1  ;;  %v328_v7 = vpop.trf.xlu0  ;;  %522 = vxpose.xlu1.b32.start [1/6] (short) %v100_v4, 128  ;;  %490 = vxpose.xlu0.b32.start [1/6] (short) %v94_v5, 128 }
 0x18c   :  { %681 = vst.msk [vmem:[%s1734_s1 + $0x3f0] sm:$0xff] %vm554_vm0, %v360_v6  ;;  %665 = vst.msk [vmem:[%s1734_s1 + $0x370] sm:$0xff] %vm554_vm0, %v328_v7 }
 0x18f   :  { %v361_v10 = vpop.trf.xlu1  ;;  %v329_v11 = vpop.trf.xlu0  ;;  %523 = vxpose.xlu1.b32.cont [2/6] (short) %v101_v8, 128  ;;  %491 = vxpose.xlu0.b32.cont [2/6] (short) %v95_v9, 128 }
 0x190   :  { %682 = vst.msk [vmem:[%s1734_s1 + $0x3f8] sm:$0xff] %vm554_vm0, %v361_v10  ;;  %666 = vst.msk [vmem:[%s1734_s1 + $0x378] sm:$0xff] %vm554_vm0, %v329_v11 }
 0x193   :  { %v410_v14 = vpop.trf.xlu1  ;;  %v378_v15 = vpop.trf.xlu0  ;;  %524 = vxpose.xlu1.b32.cont [3/6] (short) %v102_v12, 128  ;;  %492 = vxpose.xlu0.b32.cont [3/6] (short) %v96_v13, 128 }
 0x194   :  { %699 = vst.msk [vmem:[%s1734_s1 + $0x480] sm:$0xff] %vm554_vm0, %v410_v14  ;;  %683 = vst.msk [vmem:[%s1734_s1 + $0x400] sm:$0xff] %vm554_vm0, %v378_v15 }
 0x197   :  { %v411_v18 = vpop.trf.xlu1  ;;  %v379_v19 = vpop.trf.xlu0  ;;  %525 = vxpose.xlu1.b32.cont [4/6] (short) %v103_v16, 128  ;;  %493 = vxpose.xlu0.b32.cont [4/6] (short) %v97_v17, 128 }
 0x198   :  { %700 = vst.msk [vmem:[%s1734_s1 + $0x488] sm:$0xff] %vm554_vm0, %v411_v18  ;;  %684 = vst.msk [vmem:[%s1734_s1 + $0x408] sm:$0xff] %vm554_vm0, %v379_v19 }
 0x19b   :  { %v412_v22 = vpop.trf.xlu1  ;;  %v380_v23 = vpop.trf.xlu0  ;;  %526 = vxpose.xlu1.b32.cont [5/6] (short) %v104_v20, 128  ;;  %494 = vxpose.xlu0.b32.cont [5/6] (short) %v98_v21, 128 }
 0x19c   :  { %701 = vst.msk [vmem:[%s1734_s1 + $0x490] sm:$0xff] %vm554_vm0, %v412_v22  ;;  %685 = vst.msk [vmem:[%s1734_s1 + $0x410] sm:$0xff] %vm554_vm0, %v380_v23 }
 0x19f   :  { %v413_v26 = vpop.trf.xlu1  ;;  %v381_v27 = vpop.trf.xlu0  ;;  %527 = vxpose.xlu1.b32.end [6/6] (short) %v105_v24, 128  ;;  %495 = vxpose.xlu0.b32.end [6/6] (short) %v99_v25, 128 }
 0x1a0   :  { %702 = vst.msk [vmem:[%s1734_s1 + $0x498] sm:$0xff] %vm554_vm0, %v413_v26  ;;  %686 = vst.msk [vmem:[%s1734_s1 + $0x418] sm:$0xff] %vm554_vm0, %v381_v27 }
 0x1a3   :  { %v414_v28 = vpop.trf.xlu1  ;;  %v382_v29 = vpop.trf.xlu0 }
 0x1a4   :  { %703 = vst.msk [vmem:[%s1734_s1 + $0x4a0] sm:$0xff] %vm554_vm0, %v414_v28  ;;  %687 = vst.msk [vmem:[%s1734_s1 + $0x420] sm:$0xff] %vm554_vm0, %v382_v29 }
 0x1a7   :  { %v415_v30 = vpop.trf.xlu1  ;;  %v383_v31 = vpop.trf.xlu0 }
 0x1a8   :  { %704 = vst.msk [vmem:[%s1734_s1 + $0x4a8] sm:$0xff] %vm554_vm0, %v415_v30  ;;  %688 = vst.msk [vmem:[%s1734_s1 + $0x428] sm:$0xff] %vm554_vm0, %v383_v31 }
 0x1ab   :  { %v416_v32 = vpop.trf.xlu1  ;;  %v384_v33 = vpop.trf.xlu0 }
 0x1ac   :  { %705 = vst.msk [vmem:[%s1734_s1 + $0x4b0] sm:$0xff] %vm554_vm0, %v416_v32  ;;  %689 = vst.msk [vmem:[%s1734_s1 + $0x430] sm:$0xff] %vm554_vm0, %v384_v33 }
 0x1af   :  { %v417_v34 = vpop.trf.xlu1  ;;  %v385_v35 = vpop.trf.xlu0 }
 0x1b0   :  { %706 = vst.msk [vmem:[%s1734_s1 + $0x4b8] sm:$0xff] %vm554_vm0, %v417_v34  ;;  %690 = vst.msk [vmem:[%s1734_s1 + $0x438] sm:$0xff] %vm554_vm0, %v385_v35 }
 0x1b3   :  { %v418_v36 = vpop.trf.xlu1  ;;  %v386_v37 = vpop.trf.xlu0 }
 0x1b4   :  { %707 = vst.msk [vmem:[%s1734_s1 + $0x4c0] sm:$0xff] %vm554_vm0, %v418_v36  ;;  %691 = vst.msk [vmem:[%s1734_s1 + $0x440] sm:$0xff] %vm554_vm0, %v386_v37 }
 0x1b7   :  { %v419_v38 = vpop.trf.xlu1  ;;  %v387_v39 = vpop.trf.xlu0 }
 0x1b8   :  { %708 = vst.msk [vmem:[%s1734_s1 + $0x4c8] sm:$0xff] %vm554_vm0, %v419_v38  ;;  %692 = vst.msk [vmem:[%s1734_s1 + $0x448] sm:$0xff] %vm554_vm0, %v387_v39 }
 0x1bb   :  { %v420_v40 = vpop.trf.xlu1  ;;  %v388_v41 = vpop.trf.xlu0 }
 0x1bc   :  { %709 = vst.msk [vmem:[%s1734_s1 + $0x4d0] sm:$0xff] %vm554_vm0, %v420_v40  ;;  %693 = vst.msk [vmem:[%s1734_s1 + $0x450] sm:$0xff] %vm554_vm0, %v388_v41 }
 0x1bf   :  { %v421_v42 = vpop.trf.xlu1  ;;  %v389_v43 = vpop.trf.xlu0 }
 0x1c0   :  { %710 = vst.msk [vmem:[%s1734_s1 + $0x4d8] sm:$0xff] %vm554_vm0, %v421_v42  ;;  %694 = vst.msk [vmem:[%s1734_s1 + $0x458] sm:$0xff] %vm554_vm0, %v389_v43 }
 0x1c3   :  { %v422_v44 = vpop.trf.xlu1  ;;  %v390_v45 = vpop.trf.xlu0 }
 0x1c4   :  { %711 = vst.msk [vmem:[%s1734_s1 + $0x4e0] sm:$0xff] %vm554_vm0, %v422_v44  ;;  %695 = vst.msk [vmem:[%s1734_s1 + $0x460] sm:$0xff] %vm554_vm0, %v390_v45 }
 0x1c7   :  { %v423_v46 = vpop.trf.xlu1  ;;  %v391_v47 = vpop.trf.xlu0 }
 0x1c8   :  { %712 = vst.msk [vmem:[%s1734_s1 + $0x4e8] sm:$0xff] %vm554_vm0, %v423_v46  ;;  %696 = vst.msk [vmem:[%s1734_s1 + $0x468] sm:$0xff] %vm554_vm0, %v391_v47 }
 0x1cb   :  { %v424_v48 = vpop.trf.xlu1  ;;  %v392_v49 = vpop.trf.xlu0 }
 0x1cc   :  { %713 = vst.msk [vmem:[%s1734_s1 + $0x4f0] sm:$0xff] %vm554_vm0, %v424_v48  ;;  %697 = vst.msk [vmem:[%s1734_s1 + $0x470] sm:$0xff] %vm554_vm0, %v392_v49 }
 0x1cf   :  { %v425_v50 = vpop.trf.xlu1  ;;  %v393_v51 = vpop.trf.xlu0 }
 0x1d0   :  { %714 = vst.msk [vmem:[%s1734_s1 + $0x4f8] sm:$0xff] %vm554_vm0, %v425_v50  ;;  %698 = vst.msk [vmem:[%s1734_s1 + $0x478] sm:$0xff] %vm554_vm0, %v393_v51 }
 0x1d3   :  { %v474_v52 = vpop.trf.xlu1  ;;  %v442_v53 = vpop.trf.xlu0 }
 0x1d4   :  { %731 = vst.msk [vmem:[%s1734_s1 + $0x580] sm:$0xff] %vm554_vm0, %v474_v52  ;;  %715 = vst.msk [vmem:[%s1734_s1 + $0x500] sm:$0xff] %vm554_vm0, %v442_v53 }
 0x1d7   :  { %v475_v54 = vpop.trf.xlu1  ;;  %v443_v55 = vpop.trf.xlu0 }
 0x1d8   :  { %732 = vst.msk [vmem:[%s1734_s1 + $0x588] sm:$0xff] %vm554_vm0, %v475_v54  ;;  %716 = vst.msk [vmem:[%s1734_s1 + $0x508] sm:$0xff] %vm554_vm0, %v443_v55 }
 0x1db   :  { %v476_v56 = vpop.trf.xlu1  ;;  %v444_v57 = vpop.trf.xlu0 }
 0x1dc   :  { %733 = vst.msk [vmem:[%s1734_s1 + $0x590] sm:$0xff] %vm554_vm0, %v476_v56  ;;  %717 = vst.msk [vmem:[%s1734_s1 + $0x510] sm:$0xff] %vm554_vm0, %v444_v57 }
 0x1df   :  { %v477_v58 = vpop.trf.xlu1  ;;  %v445_v59 = vpop.trf.xlu0 }
 0x1e0   :  { %734 = vst.msk [vmem:[%s1734_s1 + $0x598] sm:$0xff] %vm554_vm0, %v477_v58  ;;  %718 = vst.msk [vmem:[%s1734_s1 + $0x518] sm:$0xff] %vm554_vm0, %v445_v59 }
 0x1e3   :  { %v478_v60 = vpop.trf.xlu1  ;;  %v446_v61 = vpop.trf.xlu0 }
 0x1e4   :  { %735 = vst.msk [vmem:[%s1734_s1 + $0x5a0] sm:$0xff] %vm554_vm0, %v478_v60  ;;  %719 = vst.msk [vmem:[%s1734_s1 + $0x520] sm:$0xff] %vm554_vm0, %v446_v61 }
 0x1e7   :  { %v479_v62 = vpop.trf.xlu1  ;;  %v447_v63 = vpop.trf.xlu0 }
 0x1e8   :  { %736 = vst.msk [vmem:[%s1734_s1 + $0x5a8] sm:$0xff] %vm554_vm0, %v479_v62  ;;  %720 = vst.msk [vmem:[%s1734_s1 + $0x528] sm:$0xff] %vm554_vm0, %v447_v63 }
 0x1eb   :  { %v480_v0 = vpop.trf.xlu1  ;;  %v448_v1 = vpop.trf.xlu0 }
 0x1ec   :  { %737 = vst.msk [vmem:[%s1734_s1 + $0x5b0] sm:$0xff] %vm554_vm0, %v480_v0  ;;  %721 = vst.msk [vmem:[%s1734_s1 + $0x530] sm:$0xff] %vm554_vm0, %v448_v1 }
 0x1ef   :  { %v481_v2 = vpop.trf.xlu1  ;;  %v449_v3 = vpop.trf.xlu0 }
 0x1f0   :  { %738 = vst.msk [vmem:[%s1734_s1 + $0x5b8] sm:$0xff] %vm554_vm0, %v481_v2  ;;  %722 = vst.msk [vmem:[%s1734_s1 + $0x538] sm:$0xff] %vm554_vm0, %v449_v3 }
 0x1f3   :  { %v482_v4 = vpop.trf.xlu1  ;;  %v450_v5 = vpop.trf.xlu0 }
 0x1f4   :  { %739 = vst.msk [vmem:[%s1734_s1 + $0x5c0] sm:$0xff] %vm554_vm0, %v482_v4  ;;  %723 = vst.msk [vmem:[%s1734_s1 + $0x540] sm:$0xff] %vm554_vm0, %v450_v5 }
 0x1f7   :  { %v483_v6 = vpop.trf.xlu1  ;;  %v451_v7 = vpop.trf.xlu0 }
 0x1f8   :  { %740 = vst.msk [vmem:[%s1734_s1 + $0x5c8] sm:$0xff] %vm554_vm0, %v483_v6  ;;  %724 = vst.msk [vmem:[%s1734_s1 + $0x548] sm:$0xff] %vm554_vm0, %v451_v7 }
 0x1fb   :  { %v484_v8 = vpop.trf.xlu1  ;;  %v452_v9 = vpop.trf.xlu0 }
 0x1fc   :  { %741 = vst.msk [vmem:[%s1734_s1 + $0x5d0] sm:$0xff] %vm554_vm0, %v484_v8  ;;  %725 = vst.msk [vmem:[%s1734_s1 + $0x550] sm:$0xff] %vm554_vm0, %v452_v9 }
 0x1ff   :  { %v485_v10 = vpop.trf.xlu1  ;;  %v453_v11 = vpop.trf.xlu0 }
 0x200   :  { %742 = vst.msk [vmem:[%s1734_s1 + $0x5d8] sm:$0xff] %vm554_vm0, %v485_v10  ;;  %726 = vst.msk [vmem:[%s1734_s1 + $0x558] sm:$0xff] %vm554_vm0, %v453_v11 }
 0x203   :  { %v486_v12 = vpop.trf.xlu1  ;;  %v454_v13 = vpop.trf.xlu0 }
 0x204   :  { %743 = vst.msk [vmem:[%s1734_s1 + $0x5e0] sm:$0xff] %vm554_vm0, %v486_v12  ;;  %727 = vst.msk [vmem:[%s1734_s1 + $0x560] sm:$0xff] %vm554_vm0, %v454_v13 }
 0x207   :  { %v487_v14 = vpop.trf.xlu1  ;;  %v455_v15 = vpop.trf.xlu0 }
 0x208   :  { %744 = vst.msk [vmem:[%s1734_s1 + $0x5e8] sm:$0xff] %vm554_vm0, %v487_v14  ;;  %728 = vst.msk [vmem:[%s1734_s1 + $0x568] sm:$0xff] %vm554_vm0, %v455_v15 }
 0x20b   :  { %v488_v16 = vpop.trf.xlu1  ;;  %v456_v17 = vpop.trf.xlu0 }
 0x20c   :  { %745 = vst.msk [vmem:[%s1734_s1 + $0x5f0] sm:$0xff] %vm554_vm0, %v488_v16  ;;  %729 = vst.msk [vmem:[%s1734_s1 + $0x570] sm:$0xff] %vm554_vm0, %v456_v17 }
 0x20f   :  { %v489_v18 = vpop.trf.xlu1  ;;  %v457_v19 = vpop.trf.xlu0 }
 0x210   :  { %746 = vst.msk [vmem:[%s1734_s1 + $0x5f8] sm:$0xff] %vm554_vm0, %v489_v18  ;;  %730 = vst.msk [vmem:[%s1734_s1 + $0x578] sm:$0xff] %vm554_vm0, %v457_v19 }
 0x213   :  { %v538_v20 = vpop.trf.xlu1  ;;  %v506_v21 = vpop.trf.xlu0 }
 0x214   :  { %763 = vst.msk [vmem:[%s1734_s1 + $0x680] sm:$0xff] %vm554_vm0, %v538_v20  ;;  %747 = vst.msk [vmem:[%s1734_s1 + $0x600] sm:$0xff] %vm554_vm0, %v506_v21 }
 0x217   :  { %v539_v22 = vpop.trf.xlu1  ;;  %v507_v23 = vpop.trf.xlu0 }
 0x218   :  { %764 = vst.msk [vmem:[%s1734_s1 + $0x688] sm:$0xff] %vm554_vm0, %v539_v22  ;;  %748 = vst.msk [vmem:[%s1734_s1 + $0x608] sm:$0xff] %vm554_vm0, %v507_v23 }
 0x21b   :  { %v540_v24 = vpop.trf.xlu1  ;;  %v508_v25 = vpop.trf.xlu0 }
 0x21c   :  { %765 = vst.msk [vmem:[%s1734_s1 + $0x690] sm:$0xff] %vm554_vm0, %v540_v24  ;;  %749 = vst.msk [vmem:[%s1734_s1 + $0x610] sm:$0xff] %vm554_vm0, %v508_v25 }
 0x21f   :  { %v541_v26 = vpop.trf.xlu1  ;;  %v509_v27 = vpop.trf.xlu0 }
 0x220   :  { %766 = vst.msk [vmem:[%s1734_s1 + $0x698] sm:$0xff] %vm554_vm0, %v541_v26  ;;  %750 = vst.msk [vmem:[%s1734_s1 + $0x618] sm:$0xff] %vm554_vm0, %v509_v27 }
 0x223   :  { %v542_v28 = vpop.trf.xlu1  ;;  %v510_v29 = vpop.trf.xlu0 }
 0x224   :  { %767 = vst.msk [vmem:[%s1734_s1 + $0x6a0] sm:$0xff] %vm554_vm0, %v542_v28  ;;  %751 = vst.msk [vmem:[%s1734_s1 + $0x620] sm:$0xff] %vm554_vm0, %v510_v29 }
 0x227   :  { %v543_v30 = vpop.trf.xlu1  ;;  %v511_v31 = vpop.trf.xlu0 }
 0x228   :  { %768 = vst.msk [vmem:[%s1734_s1 + $0x6a8] sm:$0xff] %vm554_vm0, %v543_v30  ;;  %752 = vst.msk [vmem:[%s1734_s1 + $0x628] sm:$0xff] %vm554_vm0, %v511_v31 }
 0x22b   :  { %v544_v32 = vpop.trf.xlu1  ;;  %v512_v33 = vpop.trf.xlu0 }
 0x22c   :  { %769 = vst.msk [vmem:[%s1734_s1 + $0x6b0] sm:$0xff] %vm554_vm0, %v544_v32  ;;  %753 = vst.msk [vmem:[%s1734_s1 + $0x630] sm:$0xff] %vm554_vm0, %v512_v33 }
 0x22f   :  { %v545_v34 = vpop.trf.xlu1  ;;  %v513_v35 = vpop.trf.xlu0 }
 0x230   :  { %770 = vst.msk [vmem:[%s1734_s1 + $0x6b8] sm:$0xff] %vm554_vm0, %v545_v34  ;;  %754 = vst.msk [vmem:[%s1734_s1 + $0x638] sm:$0xff] %vm554_vm0, %v513_v35 }
 0x233   :  { %v546_v36 = vpop.trf.xlu1  ;;  %v514_v37 = vpop.trf.xlu0 }
 0x234   :  { %771 = vst.msk [vmem:[%s1734_s1 + $0x6c0] sm:$0xff] %vm554_vm0, %v546_v36  ;;  %755 = vst.msk [vmem:[%s1734_s1 + $0x640] sm:$0xff] %vm554_vm0, %v514_v37 }
 0x237   :  { %v547_v38 = vpop.trf.xlu1  ;;  %v515_v39 = vpop.trf.xlu0 }
 0x238   :  { %772 = vst.msk [vmem:[%s1734_s1 + $0x6c8] sm:$0xff] %vm554_vm0, %v547_v38  ;;  %756 = vst.msk [vmem:[%s1734_s1 + $0x648] sm:$0xff] %vm554_vm0, %v515_v39 }
 0x23b   :  { %v548_v40 = vpop.trf.xlu1  ;;  %v516_v41 = vpop.trf.xlu0 }
 0x23c   :  { %773 = vst.msk [vmem:[%s1734_s1 + $0x6d0] sm:$0xff] %vm554_vm0, %v548_v40  ;;  %757 = vst.msk [vmem:[%s1734_s1 + $0x650] sm:$0xff] %vm554_vm0, %v516_v41 }
 0x23f   :  { %v549_v42 = vpop.trf.xlu1  ;;  %v517_v43 = vpop.trf.xlu0 }
 0x240   :  { %774 = vst.msk [vmem:[%s1734_s1 + $0x6d8] sm:$0xff] %vm554_vm0, %v549_v42  ;;  %758 = vst.msk [vmem:[%s1734_s1 + $0x658] sm:$0xff] %vm554_vm0, %v517_v43 }
 0x243   :  { %v550_v44 = vpop.trf.xlu1  ;;  %v518_v45 = vpop.trf.xlu0 }
 0x244   :  { %775 = vst.msk [vmem:[%s1734_s1 + $0x6e0] sm:$0xff] %vm554_vm0, %v550_v44  ;;  %759 = vst.msk [vmem:[%s1734_s1 + $0x660] sm:$0xff] %vm554_vm0, %v518_v45 }
 0x247   :  { %v551_v46 = vpop.trf.xlu1  ;;  %v519_v47 = vpop.trf.xlu0 }
 0x248   :  { %776 = vst.msk [vmem:[%s1734_s1 + $0x6e8] sm:$0xff] %vm554_vm0, %v551_v46  ;;  %760 = vst.msk [vmem:[%s1734_s1 + $0x668] sm:$0xff] %vm554_vm0, %v519_v47 }
 0x24b   :  { %v552_v48 = vpop.trf.xlu1  ;;  %v520_v49 = vpop.trf.xlu0 }
 0x24c   :  { %777 = vst.msk [vmem:[%s1734_s1 + $0x6f0] sm:$0xff] %vm554_vm0, %v552_v48  ;;  %761 = vst.msk [vmem:[%s1734_s1 + $0x670] sm:$0xff] %vm554_vm0, %v520_v49 }
 0x24f   :  { %v553_v50 = vpop.trf.xlu1  ;;  %v521_v51 = vpop.trf.xlu0 }
 0x250   :  { %778 = vst.msk [vmem:[%s1734_s1 + $0x6f8] sm:$0xff] %vm554_vm0, %v553_v50  ;;  %762 = vst.msk [vmem:[%s1734_s1 + $0x678] sm:$0xff] %vm554_vm0, %v521_v51 }
 0x251   :  { %783 = vsyncpa [#allocation3], 1 }

</bundles_post_ra>
